<compile_context>
chip_gen: v5e
topology: v5e:2x2
jax: 0.10.0
libtpu: 0.0.40
codegen_flags: <defaults>
</compile_context>

<pallas_src>
import functools

import jax
import jax.numpy as jnp
from jax import lax
from jax.experimental import pallas as pl
from jax.experimental.pallas import tpu as pltpu


def _cdiv(a, b):
    return -(-a // b)


def _down_wt_kernel(x_ref, w_ref, sel_ref, shift_ref, o_ref, feat_ref, *,
                    C, Cout, W, Wh, THh):
    # x_ref:     (C, THh, 2W)   THh input row-pairs; lanes [0:W] = row 2i, [W:2W] = row 2i+1
    # w_ref:     (Cout, 4C)     Haar + 1x1 conv + BN-scale folded weight, columns = [a; b; c; d]
    # sel_ref:   (W, 2Wh)       0/1 even/odd column selector (exact on the MXU)
    # shift_ref: (Cout, 1)      folded conv bias + BN shift
    # o_ref:     (Cout, THh, Wh)
    # feat_ref:  (4C, Wh)       VMEM scratch: per-row matmul operand
    w = w_ref[...]
    sel = sel_ref[...]
    shift = shift_ref[...]

    def body(i, carry):
        row = x_ref[:, i, :]                                          # (C, 2W)
        top = row[:, :W]                                              # input row 2i
        bot = row[:, W:]                                              # input row 2i+1
        # Lane de-interleave on the MXU: gt = [a | b], gb = [c | d]  (exact 0/1 picks).
        gt = jnp.dot(top, sel, preferred_element_type=jnp.float32)    # (C, 2Wh)
        gb = jnp.dot(bot, sel, preferred_element_type=jnp.float32)    # (C, 2Wh)
        feat_ref[0 * C:1 * C, :] = gt[:, :Wh]                         # a
        feat_ref[1 * C:2 * C, :] = gt[:, Wh:]                         # b
        feat_ref[2 * C:3 * C, :] = gb[:, :Wh]                         # c
        feat_ref[3 * C:4 * C, :] = gb[:, Wh:]                         # d
        # Folded Haar + 1x1 conv + BN scale, then shift + ReLU.
        y = jnp.dot(w, feat_ref[...], preferred_element_type=jnp.float32)  # (Cout, Wh)
        o_ref[:, i, :] = jnp.maximum(y + shift, 0.0)
        return carry

    lax.fori_loop(0, THh, body, 0)


@jax.jit
def down_wt(x, conv_w, conv_b, bn_gamma, bn_beta, bn_mean, bn_var, eps=1e-5):
    """x: (B, C, H, W) float32 NCHW.  Returns (B, Cout, H//2, W//2) float32 NCHW."""
    B, C, H, W = x.shape
    # TODO(synk): odd H/W needs the DWT 'zero'-mode boundary row/column (output ceil(H/2)).
    assert H % 2 == 0 and W % 2 == 0, "Down_wt kernel assumes even spatial dims"
    Cout = conv_w.shape[0]
    Hh, Wh = H // 2, W // 2

    x = x.astype(jnp.float32)
    # Metadata-only reshape: (..., hh, 0:W) = input row 2*hh, (..., hh, W:2W) = row 2*hh+1.
    x4 = x.reshape(B, C, Hh, 2 * W)

    # ---- fold Haar analysis + 1x1 conv + BN(eval) into one (Cout, 4C) weight + shift ----
    # pytorch_wavelets haar / mode='zero' bands over corners [a,b,c,d] =
    # [x[2i,2j], x[2i,2j+1], x[2i+1,2j], x[2i+1,2j+1]]:
    #   yL = (a+b+c+d)/2,  yH[...,0]=(a+b-c-d)/2 ("y_HL"),
    #   yH[...,1]=(a-b+c-d)/2 ("y_LH"),  yH[...,2]=(a-b-c+d)/2 ("y_HH").
    S = 0.5 * jnp.array([[1.,  1.,  1.,  1.],
                         [1.,  1., -1., -1.],
                         [1., -1.,  1., -1.],
                         [1., -1., -1.,  1.]], dtype=jnp.float32)
    M = jnp.kron(S, jnp.eye(C, dtype=jnp.float32))                       # (4C, 4C)
    w_conv = conv_w.reshape(Cout, 4 * C).astype(jnp.float32)
    bn_scale = (bn_gamma / jnp.sqrt(bn_var + eps)).astype(jnp.float32)   # (Cout,)
    w_fold = bn_scale[:, None] * (w_conv @ M)                            # (Cout, 4C) over [a;b;c;d]
    shift = ((conv_b - bn_mean) * bn_scale + bn_beta).reshape(Cout, 1).astype(jnp.float32)

    # 0/1 even/odd column selector: cols [:Wh] pick j = 2*jo, cols [Wh:] pick j = 2*jo+1.
    j = jnp.arange(W, dtype=jnp.int32)[:, None]
    jo = jnp.arange(Wh, dtype=jnp.int32)[None, :]
    sel = jnp.concatenate([j == 2 * jo, j == 2 * jo + 1], axis=1).astype(jnp.float32)  # (W, 2Wh)

    # ---- tile sizing: large, VMEM-budgeted row blocks (per-generation limits) ----
    try:
        info = pltpu.get_tpu_info()
        vmem_cap = int(getattr(info, "vmem_capacity_bytes", 64 * 1024 * 1024))
    except Exception:
        vmem_cap = 64 * 1024 * 1024
    budget = min(24 * 1024 * 1024, vmem_cap // 4)

    in_row = C * 2 * W * 4                  # input bytes per output row
    out_row = Cout * Wh * 4
    per_row = 2 * (in_row + out_row)        # double-buffered in + out
    want = max(8, _cdiv(4 * 1024 * 1024, in_row))      # >= ~4 MiB of input per grid step
    thh = min(Hh, want, max(1, budget // per_row))
    if thh < Hh:                            # block dim must be a multiple of 8 or the full dim
        thh = min(Hh, max(8, (thh // 8) * 8))
    if B * _cdiv(Hh, thh) < 2 and Hh > 8:   # keep >= 2 blocks so both v7x TensorCores get work
        thh = min(thh, max(8, (_cdiv(Hh, 2) // 8) * 8))
    grid = (B, _cdiv(Hh, thh))

    weight_bytes = int(w_fold.size + sel.size + shift.size) * 4
    need = per_row * thh + 2 * weight_bytes + 4 * C * Wh * 4 + (2 << 20)
    vmem_limit = int(min(max(need, 32 * 1024 * 1024),
                         max(32 * 1024 * 1024, (vmem_cap * 3) // 4)))

    flops = 2 * B * Hh * (2 * (C * W * 2 * Wh) + Cout * 4 * C * Wh)
    bytes_accessed = (int(x4.size) + B * Cout * Hh * Wh) * 4 + weight_bytes
    cost = pl.CostEstimate(flops=int(flops), transcendentals=0,
                           bytes_accessed=int(bytes_accessed))

    kernel = functools.partial(_down_wt_kernel, C=C, Cout=Cout, W=W, Wh=Wh, THh=thh)

    out = pl.pallas_call(
        kernel,
        out_shape=jax.ShapeDtypeStruct((B, Cout, Hh, Wh), jnp.float32),
        grid_spec=pltpu.PrefetchScalarGridSpec(
            num_scalar_prefetch=0,
            grid=grid,
            in_specs=[
                pl.BlockSpec((None, C, thh, 2 * W), lambda b, h: (b, 0, h, 0)),
                pl.BlockSpec((Cout, 4 * C), lambda b, h: (0, 0)),
                pl.BlockSpec((W, 2 * Wh), lambda b, h: (0, 0)),
                pl.BlockSpec((Cout, 1), lambda b, h: (0, 0)),
            ],
            out_specs=pl.BlockSpec((None, Cout, thh, Wh), lambda b, h: (b, 0, h, 0)),
            scratch_shapes=[pltpu.VMEM((4 * C, Wh), jnp.float32)],
        ),
        compiler_params=pltpu.CompilerParams(
            dimension_semantics=("parallel", "parallel"),
            vmem_limit_bytes=vmem_limit),
        cost_estimate=cost,
    )(x4, w_fold, sel, shift)
    return out


def _reference(x, conv_w, conv_b, bn_gamma, bn_beta, bn_mean, bn_var, eps=1e-5):
    # pure-JAX reference (NCHW) for validation
    a = x[:, :, 0::2, 0::2]
    b = x[:, :, 0::2, 1::2]
    c = x[:, :, 1::2, 0::2]
    d = x[:, :, 1::2, 1::2]
    ll = (a + b + c + d) * 0.5
    hl = (a + b - c - d) * 0.5
    lh = (a - b + c - d) * 0.5
    hh = (a - b - c + d) * 0.5
    feats = jnp.concatenate([ll, hl, lh, hh], axis=1)                    # (B, 4C, Hh, Wh)
    y = jnp.einsum('bchw,oc->bohw', feats, conv_w.reshape(conv_w.shape[0], -1)) \
        + conv_b[None, :, None, None]
    bn_scale = bn_gamma / jnp.sqrt(bn_var + eps)
    y = (y - bn_mean[None, :, None, None]) * bn_scale[None, :, None, None] \
        + bn_beta[None, :, None, None]
    return jnp.maximum(y, 0.0)


if __name__ == "__main__":
    key = jax.random.PRNGKey(0)
    B, C, H, W = 2, 4, 16, 16
    Cout = 8

    k_x, k_w, k_b, k_g, k_bt, k_m, k_v = jax.random.split(key, 7)
    x = jax.random.normal(k_x, (B, C, H, W), dtype=jnp.float32)

    # deterministic synthetic parameters (shapes follow the module __init__)
    conv_w = jax.random.normal(k_w, (Cout, C * 4, 1, 1), dtype=jnp.float32) * 0.1
    conv_b = jax.random.normal(k_b, (Cout,), dtype=jnp.float32) * 0.1
    bn_gamma = 1.0 + 0.1 * jax.random.normal(k_g, (Cout,), dtype=jnp.float32)
    bn_beta = 0.1 * jax.random.normal(k_bt, (Cout,), dtype=jnp.float32)
    bn_mean = 0.1 * jax.random.normal(k_m, (Cout,), dtype=jnp.float32)
    bn_var = jnp.abs(jax.random.normal(k_v, (Cout,), dtype=jnp.float32)) + 0.5

    out = down_wt(x, conv_w, conv_b, bn_gamma, bn_beta, bn_mean, bn_var)
    out = jax.block_until_ready(out)

    ref = _reference(x, conv_w, conv_b, bn_gamma, bn_beta, bn_mean, bn_var)
    assert out.shape == (B, Cout, H // 2, W // 2)
    assert jnp.allclose(out, ref, atol=3e-5, rtol=3e-5), \
        float(jnp.max(jnp.abs(out - ref)))

    print("KERNEL_OK")
</pallas_src>

<mosaic_0001>
module attributes {stable_mosaic.version = 11 : i64} {
  func.func @_down_wt_kernel(%arg0: i32, %arg1: i32, %arg2: memref<1x4x8x32xf32, #tpu.memory_space<vmem>>, %arg3: memref<8x16xf32, #tpu.memory_space<vmem>>, %arg4: memref<16x16xf32, #tpu.memory_space<vmem>>, %arg5: memref<8x1xf32, #tpu.memory_space<vmem>>, %arg6: memref<1x8x8x8xf32, #tpu.memory_space<vmem>>, %arg7: memref<16x8xf32, #tpu.memory_space<vmem>>) attributes {dimension_semantics = [#tpu.dimension_semantics<parallel>, #tpu.dimension_semantics<parallel>], iteration_bounds = array<i64: 2, 1>, scalar_prefetch = 0 : i64, scratch_operands = 1 : i64, tpu.core_type = #tpu.core_type<tc>, window_params = [{transform_indices = @transform_0, window_bounds = array<i64: 1, 4, 8, 32>}, {pipeline_mode = #tpu.pipeline_mode<synchronous>, transform_indices = @transform_1, window_bounds = array<i64: 8, 16>}, {pipeline_mode = #tpu.pipeline_mode<synchronous>, transform_indices = @transform_2, window_bounds = array<i64: 16, 16>}, {pipeline_mode = #tpu.pipeline_mode<synchronous>, transform_indices = @transform_3, window_bounds = array<i64: 8, 1>}, {transform_indices = @transform_4, window_bounds = array<i64: 1, 8, 8, 8>}]} {
    %c0 = arith.constant 0 : index
    %c0_0 = arith.constant 0 : index
    %0 = vector.load %arg3[%c0, %c0_0] : memref<8x16xf32, #tpu.memory_space<vmem>>, vector<8x16xf32>
    %c0_1 = arith.constant 0 : index
    %c0_2 = arith.constant 0 : index
    %1 = vector.load %arg4[%c0_1, %c0_2] : memref<16x16xf32, #tpu.memory_space<vmem>>, vector<16x16xf32>
    %c0_3 = arith.constant 0 : index
    %c0_4 = arith.constant 0 : index
    %2 = vector.load %arg5[%c0_3, %c0_4] : memref<8x1xf32, #tpu.memory_space<vmem>>, vector<8x1xf32>
    %c0_i32 = arith.constant 0 : i32
    %c8_i32 = arith.constant 8 : i32
    %3 = arith.addi %c0_i32, %c8_i32 : i32
    %c1_i32 = arith.constant 1 : i32
    scf.for %arg8 = %c0_i32 to %3 step %c1_i32  : i32 {
      %c0_6 = arith.constant 0 : index
      %c0_7 = arith.constant 0 : index
      %4 = arith.index_cast %arg8 : i32 to index
      %c0_8 = arith.constant 0 : index
      %5 = vector.load %arg2[%c0_6, %c0_7, %4, %c0_8] : memref<1x4x8x32xf32, #tpu.memory_space<vmem>>, vector<1x4x1x32xf32>
      %6 = vector.shape_cast %5 : vector<1x4x1x32xf32> to vector<4x32xf32>
      %7 = vector.extract_strided_slice %6 {offsets = [0, 0], sizes = [4, 16], strides = [1, 1]} : vector<4x32xf32> to vector<4x16xf32>
      %8 = vector.extract_strided_slice %6 {offsets = [0, 16], sizes = [4, 16], strides = [1, 1]} : vector<4x32xf32> to vector<4x16xf32>
      %cst = arith.constant dense<0.000000e+00> : vector<4x16xf32>
      %9 = tpu.matmul %7, %1, %cst {dimension_numbers = #tpu.dot_dimension_numbers<[1], [0], [0], [1], [0, 0, 1, 1], [], []>} : vector<4x16xf32>, vector<16x16xf32>, vector<4x16xf32> -> vector<4x16xf32>
      %cst_9 = arith.constant dense<0.000000e+00> : vector<4x16xf32>
      %10 = tpu.matmul %8, %1, %cst_9 {dimension_numbers = #tpu.dot_dimension_numbers<[1], [0], [0], [1], [0, 0, 1, 1], [], []>} : vector<4x16xf32>, vector<16x16xf32>, vector<4x16xf32> -> vector<4x16xf32>
      %11 = vector.extract_strided_slice %9 {offsets = [0, 0], sizes = [4, 8], strides = [1, 1]} : vector<4x16xf32> to vector<4x8xf32>
      %c0_10 = arith.constant 0 : index
      %c0_11 = arith.constant 0 : index
      %12 = vector.load %arg7[%c0_10, %c0_11] : memref<16x8xf32, #tpu.memory_space<vmem>>, vector<4x8xf32>
      tpu.vector_store %arg7[%c0_10, %c0_11], %11 {strides = array<i32>} : memref<16x8xf32, #tpu.memory_space<vmem>>, vector<4x8xf32>,
      %13 = vector.extract_strided_slice %9 {offsets = [0, 8], sizes = [4, 8], strides = [1, 1]} : vector<4x16xf32> to vector<4x8xf32>
      %c4 = arith.constant 4 : index
      %c0_12 = arith.constant 0 : index
      %14 = vector.load %arg7[%c4, %c0_12] : memref<16x8xf32, #tpu.memory_space<vmem>>, vector<4x8xf32>
      tpu.vector_store %arg7[%c4, %c0_12], %13 {strides = array<i32>} : memref<16x8xf32, #tpu.memory_space<vmem>>, vector<4x8xf32>,
      %15 = vector.extract_strided_slice %10 {offsets = [0, 0], sizes = [4, 8], strides = [1, 1]} : vector<4x16xf32> to vector<4x8xf32>
      %c8 = arith.constant 8 : index
      %c0_13 = arith.constant 0 : index
      %16 = vector.load %arg7[%c8, %c0_13] : memref<16x8xf32, #tpu.memory_space<vmem>>, vector<4x8xf32>
      tpu.vector_store %arg7[%c8, %c0_13], %15 {strides = array<i32>} : memref<16x8xf32, #tpu.memory_space<vmem>>, vector<4x8xf32>,
      %17 = vector.extract_strided_slice %10 {offsets = [0, 8], sizes = [4, 8], strides = [1, 1]} : vector<4x16xf32> to vector<4x8xf32>
      %c12 = arith.constant 12 : index
      %c0_14 = arith.constant 0 : index
      %18 = vector.load %arg7[%c12, %c0_14] : memref<16x8xf32, #tpu.memory_space<vmem>>, vector<4x8xf32>
      tpu.vector_store %arg7[%c12, %c0_14], %17 {strides = array<i32>} : memref<16x8xf32, #tpu.memory_space<vmem>>, vector<4x8xf32>,
      %c0_15 = arith.constant 0 : index
      %c0_16 = arith.constant 0 : index
      %19 = vector.load %arg7[%c0_15, %c0_16] : memref<16x8xf32, #tpu.memory_space<vmem>>, vector<16x8xf32>
      %cst_17 = arith.constant dense<0.000000e+00> : vector<8x8xf32>
      %20 = tpu.matmul %0, %19, %cst_17 {dimension_numbers = #tpu.dot_dimension_numbers<[1], [0], [0], [1], [0, 0, 1, 1], [], []>} : vector<8x16xf32>, vector<16x8xf32>, vector<8x8xf32> -> vector<8x8xf32>
      %21 = vector.broadcast %2 : vector<8x1xf32> to vector<8x8xf32>
      %22 = arith.addf %20, %21 : vector<8x8xf32>
      %cst_18 = arith.constant 0.000000e+00 : f32
      %23 = vector.broadcast %cst_18 : f32 to vector<8x8xf32>
      %24 = arith.maximumf %22, %23 : vector<8x8xf32>
      %c0_19 = arith.constant 0 : index
      %c0_20 = arith.constant 0 : index
      %25 = arith.index_cast %arg8 : i32 to index
      %c0_21 = arith.constant 0 : index
      %26 = vector.load %arg6[%c0_19, %c0_20, %25, %c0_21] : memref<1x8x8x8xf32, #tpu.memory_space<vmem>>, vector<1x8x1x8xf32>
      %27 = vector.shape_cast %26 : vector<1x8x1x8xf32> to vector<8x8xf32>
      %28 = vector.shape_cast %24 : vector<8x8xf32> to vector<1x8x1x8xf32>
      tpu.vector_store %arg6[%c0_19, %c0_20, %25, %c0_21], %28 {strides = array<i32>} : memref<1x8x8x8xf32, #tpu.memory_space<vmem>>, vector<1x8x1x8xf32>,
    }
    %c8_i32_5 = arith.constant 8 : i32
    return
  }
  func.func @transform_0(%arg0: i32, %arg1: i32) -> (i32, i32, i32, i32) {
    %c0_i32 = arith.constant 0 : i32
    %c0_i32_0 = arith.constant 0 : i32
    %c0_i32_1 = arith.constant 0 : i32
    return %arg0, %c0_i32, %arg1, %c0_i32_0 : i32, i32, i32, i32
  }
  func.func @transform_1(%arg0: i32, %arg1: i32) -> (i32, i32) {
    %c0_i32 = arith.constant 0 : i32
    %c0_i32_0 = arith.constant 0 : i32
    %c0_i32_1 = arith.constant 0 : i32
    return %c0_i32, %c0_i32_0 : i32, i32
  }
  func.func @transform_2(%arg0: i32, %arg1: i32) -> (i32, i32) {
    %c0_i32 = arith.constant 0 : i32
    %c0_i32_0 = arith.constant 0 : i32
    %c0_i32_1 = arith.constant 0 : i32
    return %c0_i32, %c0_i32_0 : i32, i32
  }
  func.func @transform_3(%arg0: i32, %arg1: i32) -> (i32, i32) {
    %c0_i32 = arith.constant 0 : i32
    %c0_i32_0 = arith.constant 0 : i32
    %c0_i32_1 = arith.constant 0 : i32
    return %c0_i32, %c0_i32_0 : i32, i32
  }
  func.func @transform_4(%arg0: i32, %arg1: i32) -> (i32, i32, i32, i32) {
    %c0_i32 = arith.constant 0 : i32
    %c0_i32_0 = arith.constant 0 : i32
    %c0_i32_1 = arith.constant 0 : i32
    return %arg0, %c0_i32, %arg1, %c0_i32_0 : i32, i32, i32, i32
  }
}

</mosaic_0001>

<bundles_post_ra>
// kernel: down_wt.1
= control target key start
LH: loop header
LB: loop body
LE: loop exit
PB: predicated region body
PF: predicated region fallthrough
CT: control target
= control target key end

     0   :  { %9 = vsyncpa [#allocation4], 0  ;;  %s831_s0 = inlined_call_operand.vmem [shape: f32[2,4,8,32], index: 0, kind: input, shape index: {}]   ;;  %s832_s1 = inlined_call_operand.vmem [shape: f32[8,16], index: 1, kind: input, shape index: {}]   ;;  %s833_s2 = inlined_call_operand.vmem [shape: f32[16,16], index: 2, kind: input, shape index: {}]   ;;  %s834_s3 = inlined_call_operand.vmem [shape: f32[8,1], index: 3, kind: input, shape index: {}]   ;;  %s835_s4 = inlined_call_operand.hbm [shape: f32[2,8,8,8], index: 4, kind: output, shape index: {}]  }
   0x1   :  { %11 = vsyncpa [#allocation4 + $0x1], 0  ;;  %s673_s15 = smov 0   ;;  %s675_s16 = smov 0  }
   0x2   :  { %s677_s17 = smov 0   ;;  %s679_s18 = smov 0  }
   0x3   :  { %s681_s19 = smov 0   ;;  %s683_s20 = smov 0  }
   0x4 LB: > { %s467_s21 = sadd.s32 4294967295, %s637_s20   ;;  %s468_s22 = sadd.s32 4294967294, %s637_s20   ;;  %s637_s20 = sphi %s683_s20, %s17_s20   ;;  %s633_s19 = sphi %s681_s19, %s842_s19   ;;  %s629_s18 = sphi %s679_s18, %s841_s18   ;;  %s625_s17 = sphi %s677_s17, %s840_s17   ;;  %s621_s16 = sphi %s675_s16, %s839_s16   ;;  %s617_s15 = sphi %s673_s15, %s838_s15  }
   0x5   : > { %s29_s23 = sadd.s32 1, %s633_s19  ;;  %s129_s24 = sadd.s32 1, %s625_s17 }
   0x6   : > { %p31_p0 = scmp.ge.s32.totalorder %s29_s23, 2  ;;  %p139_p1 = scmp.ne.s32.totalorder %s625_s17, %s621_s16 }
   0x7   : > { %p140_p2 = scmp.eq.s32.totalorder %s467_s21, 1  ;;  %p145_p3 = scmp.ne.s32.totalorder %s621_s16, %s617_s15 }
   0x8   : > { %s844_s23 = smov (%p31_p0, %s29_s23), 0  ;;  %p146_p5 = scmp.eq.s32.totalorder %s468_s22, 1 }
   0x9   : > { %p713_p4 = por %p140_p2, %p139_p1  ;;  %s124_s26 = ssub.s32 %s633_s19, %s844_s23 }
   0xa   : > { %p471_p6 = scmp.ge.s32.totalorder %s637_s20, 1  ;;  %p127_p7 = scmp.eq.s32.totalorder %s124_s26, 0 }
   0xb   : > { %p720_p8 = por %p146_p5, %p145_p3  ;;  %p184_p9 = scmp.lt.s32.totalorder %s637_s20, 3 }
   0xc   : > { %s726_s28 = scalar_select %p127_p7, %s625_s17, %s129_s24  }
   0xd   : > { %p185_p10 = pnand %p471_p6, %p184_p9 }
   0xe   : > { %s210_s29 = sand.u32 (!%p185_p10), 1, %s621_s16   ;;  %p213_p11 = scmp.lt.s32.totalorder (!%p185_p10), %s629_s18, 1 }
   0xf   : > { %188 = sbr.rel (%p185_p10) target bundleno = 546 (0x222), region = 36  ;;  %s747_s10 = sshll.u32 (!%p185_p10), %s210_s29, 6 }
  0x10   : > { %s212_s26 = scalar_lea.vmem (!%p185_p10), [#allocation3], %s747_s10  ;;  %s761_s30 = smov (!%p185_p10), 0  }
  0x14   : > { %v733_v0 = vld [vmem:[%s832_s1] sm:$0xff]  ;;  %v743_v2 = vld [vmem:[%s833_s2 + $0x8] sm:$0xff]  ;;  %s214_s13 = scalar_select %p213_p11, %s629_s18, 1 }
  0x15   : > { %v738_v1 = vld [vmem:[%s833_s2] sm:$0xff] }
  0x16   : > { %v752_v3 = vld [vmem:[%s834_s3] sm:$0xff]  ;;  %s483_s14 = sshll.u32 %s214_s13, 5 }
  0x17   : > { %s758_s24 = scalar_lea.vmem %s831_s0, %s483_s14 }
  0x18 LB: >> { %266 = vmatpush.msra.mxu0 %v743_v2  ;;  %290 = vmatpush.msra.mxu1 %v743_v2  ;;  %s231_s5 = scalar_lea.vmem %s758_s24, %s641_s30  ;;  %vm241_vm0 = vcmask 1041409   ;;  %vm244_vm1 = vcmask 1042434   ;;  %vm247_vm2 = vcmask 1043459   ;;  %vm249_vm3 = vcmask 130048   ;;  %s643_s6 = smov 112   ;;  %s641_s30 = sphi %s761_s30, %s230_s30  }
  0x19   : >> { %v232_v4 = vld [vmem:[%s231_s5] sm:$0x1]  ;;  %v233_v5 = vld [vmem:[%s231_s5 + $0x8] sm:$0x1]  ;;  %v234_v6 = vld [vmem:[%s231_s5 + $0x10] sm:$0x1]  ;;  %s355_s8 = scalar_lea.vmem %s212_s26, %s641_s30 [#allocation3] }
  0x1a   : >> { %267 = vmatpush.msra.mxu0 %v738_v1  ;;  %291 = vmatpush.msra.mxu1 %v738_v1  ;;  %v235_v7 = vld [vmem:[%s231_s5 + $0x18] sm:$0x1]  ;;  %v240_v8 = vrot.slane %v233_v5, 7  ;;  %v243_v9 = vrot.slane %v234_v6, 6  ;;  %vm296_vm4 = vcmask 60416   ;;  %s644_s7 = smov 120  }
  0x1b   : >> { %v246_v10 = vrot.slane %v235_v7, 5  ;;  %v645_v18 = vmov 0   ;;  %vm356_vm5 = vcmask 57344   ;;  %s230_s30 = sadd.s32 1, %s641_s30  }
  0x1c   : >> { %v242_v11 = vsel %vm241_vm0, %v240_v8, %v232_v4  ;;  %553 = vset.pattern.permute.xlu1 %v645_v18  ;;  %554 = vset.pattern.permute.xlu0 %v645_v18  ;;  %p227_p12 = scmp.ge.s32.totalorder %s230_s30, 8  }
  0x1d   : >> { %v245_v12 = vsel %vm244_vm1, %v243_v9, %v242_v11  ;;  %s484_s9 = sshll.u32 (%p227_p12), %s629_s18, 6  ;;  %s379_s14 = sshll.u32 (%p227_p12), %s212_s26, 4  ;;  %s380_s14 = int_to_ptr.vmem [resolvable:$true] %s379_s14 }
  0x1e   : >> { %v248_v13 = vsel %vm247_vm2, %v246_v10, %v245_v12  ;;  %s378_s13 = scalar_lea.hbm (%p227_p12), %s835_s4, %s484_s9  ;;  %s366_s22 = scalar_lea.sflag (%p227_p12), [#allocation4], %s210_s29 }
  0x1f   : >> { %272 = vrot.lane.b32.xlu0 %v248_v13, %s643_s6  ;;  %475 = vmatmul.msk.f32.vlgmr.msra.gmra.mxu0 %vm249_vm3, %v248_v13  ;;  %s381_s21 = sshll.u32 (%p227_p12), %s378_s13, 4  ;;  %s575_s6 = scalar_lea.hbm (%p227_p12), %s835_s4, 128  ;;  %s382_s21 = int_to_ptr.hbm [resolvable:$true] %s381_s21 }
  0x20   : > { %s569_s5 = sshra.s32 (%p227_p12), %s382_s21, 4  ;;  %s570_s5 = int_to_ptr.hbm [resolvable:$true] %s569_s5 }
  0x21   : > { %s571_s30 = scalar_lea.hbm (%p227_p12), %s570_s5, 64  ;;  %p576_p2 = scmp.lt.s32.totalorder (%p227_p12), %s570_s5, %s835_s4 }
  0x22   : > { %p572_p13 = scmp.ne.s32.totalorder (%p227_p12), %s570_s5, %s571_s30  ;;  %p577_p3 = scmp.lt.s32.totalorder (%p227_p12), %s575_s6, %s571_s30 }
  0x24   : > { %p573_p0 = pnand (%p227_p12), %p572_p13, %p713_p4  ;;  %p578_p5 = por (%p227_p12), %p577_p3, %p576_p2 }
  0x26   : > { %p574_p1 = pneg (%p227_p12), %p573_p0 }
  0x28   : > { %p579_p6 = pnand (%p227_p12), %p578_p5, %p574_p1 }
  0x91   : >> { %v273_v14 = vpop.permute.xlu0 %272 }
  0x92   : >> { %476 = vmatmul.msk.f32.vlgmr.msra.gmra.mxu1 %vm249_vm3, %v273_v14 }
  0x9c   : >> { %v269_v15 = vpop.f32.mrf.mxu0 }
  0x9d   : >> { %297 = vst.msk [vmem:[#allocation2] sm:$0xf] %vm296_vm4, %v269_v15  ;;  %299 = vrot.lane.b32.xlu1 %v269_v15, %s644_s7 }
  0xa5   : >> { %313 = vperm.xlu1 %553, %v752_v3  }
 0x10f   : >> { %v293_v16 = vpop.f32.mrf.mxu1  ;;  %v300_v17 = vpop.permute.xlu1 %299 }
 0x110   : >> { %303 = vst.msk [vmem:[#allocation2 + $0x8] sm:$0xf] %vm296_vm4, %v293_v16  ;;  %305 = vrot.lane.b32.xlu0 %v293_v16, %s644_s7 }
 0x111   : >> { %302 = vst.msk [vmem:[#allocation2 + $0x4] sm:$0xf] %vm296_vm4, %v300_v17 }
 0x117   : >> { %v314_v22 = vpop.permute.xlu1 %313 }
 0x118   : >> { %v309_v21 = vld [vmem:[#allocation2] sm:$0xff] }
 0x182   : >> { %v306_v19 = vpop.permute.xlu0 %305 }
 0x183   : >> { %308 = vst.msk [vmem:[#allocation2 + $0xc] sm:$0xf] %vm296_vm4, %v306_v19 }
 0x18a   : >> { %v310_v20 = vld [vmem:[#allocation2 + $0x8] sm:$0xff] }
 0x18b   : >> { %333 = vmatpush.msra.mxu2 %v310_v20 }
 0x18d   : >> { %334 = vmatpush.msra.mxu2 %v309_v21 }
 0x18e   : >> { %477 = vmatmul.msk.f32.vlgmr.msra.gmra.mxu2 %vm249_vm3, %v733_v0 }
 0x211   : >> { %v336_v23 = vpop.f32.mrf.mxu2 }
 0x212   : >> { %v337_v24 = vadd.f32 %v336_v23, %v314_v22 }
 0x214   : >> { %v339_v25 = vmax.f32 %v337_v24, 0.0 }
 0x216   : >> { %v341_v26 = vrot.slane %v339_v25, 1  ;;  %v342_v27 = vrot.slane %v339_v25, 2  ;;  %v343_v28 = vrot.slane %v339_v25, 3  ;;  %357 = vst.msk [vmem:[%s355_s8] sm:$0x1] %vm356_vm5, %v339_v25  ;;  %v344_v29 = vrot.slane %v339_v25, 4 }
 0x217   : >> { %v345_v30 = vrot.slane %v339_v25, 5  ;;  %v346_v31 = vrot.slane %v339_v25, 6  ;;  %v347_v32 = vrot.slane %v339_v25, 7 }
 0x218   : >> { %358 = vst.msk [vmem:[%s355_s8 + $0x8] sm:$0x1] %vm356_vm5, %v341_v26 }
 0x219   : >> { %359 = vst.msk [vmem:[%s355_s8 + $0x10] sm:$0x1] %vm356_vm5, %v342_v27 }
 0x21a   : >> { %360 = vst.msk [vmem:[%s355_s8 + $0x18] sm:$0x1] %vm356_vm5, %v343_v28  ;;  %229 = sbr.rel (!%p227_p12) target bundleno = 24 (0x18), region = 80 }
 0x21b   : >> { %361 = vst.msk [vmem:[%s355_s8 + $0x20] sm:$0x1] %vm356_vm5, %v344_v29 }
 0x21c   : >> { %362 = vst.msk [vmem:[%s355_s8 + $0x28] sm:$0x1] %vm356_vm5, %v345_v30 }
 0x21d   : >> { %363 = vst.msk [vmem:[%s355_s8 + $0x30] sm:$0x1] %vm356_vm5, %v346_v31 }
 0x21e   : >> { %364 = vst.msk [vmem:[%s355_s8 + $0x38] sm:$0x1] %vm356_vm5, %v347_v32 }
 0x21f   : > { %582 = shalt.err (!%p579_p6)
}
 0x220   : > { %s646_s29 = smov 128   ;;  %s647_s10 = smov 8  }
 0x221   : > { %485 = dma.vmem_to_hbm [thread:$0]  (%p713_p4), %s380_s14, 1024, %s382_s21, %s366_s22, %s646_s29, %s646_s29, %s647_s10  }
 0x222 PF: > { %p491_p7 = scmp.ge.s32.totalorder %s637_s20, 2  ;;  %s396_s26 = sand.u32 1, %s617_s15  }
 0x223   : > { %s397_s9 = scalar_lea.sflag [#allocation4], %s396_s26 }
 0x224   : > { %p488_p9 = pnand %p491_p7, %p720_p8 }
 0x226   : > { %p489_p10 = pneg %p488_p9 }
 0x228   : > { %612 = dma.done.wait (%p489_p10), %s397_s9, 1024  }
 0x229   : > { %614 = vsyncadd (%p489_p10), %s397_s9, 4294966272  ;;  %s17_s20 = sadd.s32 1, %s637_s20   ;;  %s838_s15 = smov %s621_s16 }
 0x22a   : > { %p14_p11 = scmp.ge.s32.totalorder %s17_s20, 4   ;;  %s839_s16 = smov %s625_s17 }
 0x22b   : > { %s840_s17 = smov %s726_s28  ;;  %s841_s18 = smov %s633_s19 }
 0x22c   : > { %s842_s19 = smov %s844_s23  ;;  %16 = sbr.rel (!%p14_p11) target bundleno = 4 (0x4), region = 91 }
 0x231   :  { %403 = vsyncpa [#allocation4], 1 }
 0x232   :  { %405 = vsyncpa [#allocation4 + $0x1], 1 }

</bundles_post_ra>
